<compile_context>
chip_gen: v7x
topology: tpu7x:2x2x1
jax: 0.10.0
libtpu: 0.0.40
codegen_flags: <defaults>
</compile_context>

<pallas_src>
from functools import partial

import jax
import jax.numpy as jnp
from jax.experimental import pallas as pl
from jax.experimental import pallas as _pl_unused  # keep namespace minimal
from jax.experimental.pallas import tpu as pltpu  # noqa: F401  (not needed for this tiny path)


_LANES = 128


def _identity_kernel(x_ref, o_ref):
    # Pure pass-through: copy the full sublane/lane-dense block.
    o_ref[...] = x_ref[...]


@partial(jax.jit, static_argnames=())
def identity_passthrough(x):
    """Identity copy of an NCHW tensor through a Pallas kernel.

    The input is viewed as (total/128, 128) — fully dense in both sublane and
    lane dims — and moved as a single full-array block (empty grid).  The
    output aliases the input HBM buffer (pure identity, no second buffer).
    """
    B, C, H, W = x.shape
    total = B * C * H * W
    assert total % _LANES == 0, "demo shapes are chosen so total % 128 == 0"
    rows = total // _LANES
    x2d = x.reshape(rows, _LANES)  # sublane/lane-dense view

    y2d = pl.pallas_call(
        _identity_kernel,
        out_shape=jax.ShapeDtypeStruct((rows, _LANES), x.dtype),
        # Single full-array block (block_shape == array shape); empty grid =>
        # one invocation, no tiling loop, no per-grid-step overhead.
        in_specs=[pl.BlockSpec((rows, _LANES), lambda: (0, 0))],
        out_specs=pl.BlockSpec((rows, _LANES), lambda: (0, 0)),
        # Reuse the input HBM buffer for the output (identity => safe).
        input_output_aliases={0: 0},
    )(x2d)
    return y2d.reshape(B, C, H, W)


class Generator:
    """JAX/Pallas port of the (empty) PyTorch Generator."""

    def __init__(self, latent_dim, img_shape):
        # Reference __init__ defines no parameters; it only unpacks img_shape.
        channels, self.h, self.w = img_shape
        self.channels = channels
        self.latent_dim = latent_dim

    def forward(self, x, z):
        # Reference forward() is a bare `return` -> returns None.
        # No device work is done here (matches the PyTorch module exactly).
        return None

    __call__ = forward


if __name__ == "__main__":
    key = jax.random.PRNGKey(0)
    kx, kz = jax.random.split(key)

    latent_dim = 8
    img_shape = (3, 16, 16)  # (C, H, W); B*C*H*W = 1536 = 12 * 128
    B = 2

    x = jax.random.normal(kx, (B,) + img_shape, dtype=jnp.float32)
    z = jax.random.normal(kz, (B, latent_dim), dtype=jnp.float32)

    # Exercise the (jitted) Pallas identity kernel once — the on-TPU check.
    y = identity_passthrough(x)
    jax.block_until_ready(y)
    assert y.shape == x.shape and y.dtype == x.dtype
    assert bool((y == x).all())  # bit-exact identity

    # Faithful forward semantics: returns None (as in the PyTorch module),
    # performing no device work.
    gen = Generator(latent_dim, img_shape)
    out = gen(x, z)
    assert out is None

    print("KERNEL_OK")
</pallas_src>

<mosaic_0001>
module attributes {stable_mosaic.version = 11 : i64} {
  func.func @_identity_kernel(%arg0: memref<12x128xf32, #tpu.memory_space<vmem>>, %arg1: memref<12x128xf32, #tpu.memory_space<vmem>>) attributes {dimension_semantics = [], scalar_prefetch = 0 : i64, scratch_operands = 0 : i64, tpu.core_type = #tpu.core_type<tc>} {
    %c0 = arith.constant 0 : index
    %c0_0 = arith.constant 0 : index
    %0 = vector.load %arg0[%c0, %c0_0] : memref<12x128xf32, #tpu.memory_space<vmem>>, vector<12x128xf32>
    %c0_1 = arith.constant 0 : index
    %c0_2 = arith.constant 0 : index
    %1 = vector.load %arg1[%c0_1, %c0_2] : memref<12x128xf32, #tpu.memory_space<vmem>>, vector<12x128xf32>
    tpu.vector_store %arg1[%c0_1, %c0_2], %0 {strides = array<i32>} : memref<12x128xf32, #tpu.memory_space<vmem>>, vector<12x128xf32>,
    return
  }
}

</mosaic_0001>

<bundles_post_ra>
// kernel: identity_passthrough.1
= control target key start
LH: loop header
LB: loop body
LE: loop exit
PB: predicated region body
PF: predicated region fallthrough
CT: control target
= control target key end

     0   :  { %s38_s0 = inlined_call_operand.vmem [shape: f32[12,128], index: 0, kind: input, shape index: {}, may-alias: {0,1}]   ;;  %s39_s1 = inlined_call_operand.vmem [shape: f32[12,128], index: 1, kind: output, shape index: {}, may-alias: {0,1}]  }
   0x1   :  { %v8_v0 = vld [vmem:[%s38_s0] sm:$0xff]  ;;  %v9_v1 = vld [vmem:[%s38_s0 + $0x8] sm:$0xf] }
   0x2   :  { %10 = vst [vmem:[%s39_s1] sm:$0xff] %v8_v0  ;;  %11 = vst [vmem:[%s39_s1 + $0x8] sm:$0xf] %v9_v1 }

</bundles_post_ra>
